<compile_context>
chip_gen: v6e
topology: v6e:2x2x1
jax: 0.10.0
libtpu: 0.0.40
codegen_flags: <defaults>
</compile_context>

<pallas_src>
import functools

import jax
import jax.numpy as jnp
from jax.experimental import pallas as pl
from jax.experimental.pallas import tpu as pltpu

# Feature sizes of the MLP (matching the nn.Linear layers).
DIMS = (11, 128, 64, 32, 16, 1)
NEG_SLOPE = 0.01
DEFAULT_TILE_B = 4096  # batch tile; sweep 2048 / 4096 / 8192 when tuning


def _round_up(n, m):
    return ((n + m - 1) // m) * m


def _mlp_kernel(x_ref,
                w1, b1, w2, b2, w3, b3, w4, b4, w5, b5,
                o_ref):
    """Whole 5-layer MLP fused into one kernel invocation per batch tile."""
    mxu_dtype = w1.dtype  # bf16 (default) or f32, set by the wrapper

    def dense(h, w_ref, b_ref):
        # Cast only at the MXU boundary; accumulate in f32 and add the f32
        # bias, so all VPU/EUP math stays f32 (v5e has no bf16 VPU/EUP).
        return jnp.dot(h.astype(mxu_dtype), w_ref[...],
                       preferred_element_type=jnp.float32) + b_ref[...]

    def leaky_relu(h):
        # Single VALU max instead of compare + select.
        return jnp.maximum(h, NEG_SLOPE * h)

    h = leaky_relu(dense(x_ref[...], w1, b1))   # (tile_b, 128)
    h = leaky_relu(dense(h, w2, b2))            # (tile_b, 64)
    h = leaky_relu(dense(h, w3, b3))            # (tile_b, 32)
    h = leaky_relu(dense(h, w4, b4))            # (tile_b, 16)
    logits = dense(h, w5, b5)                   # (tile_b, 1)

    # sigmoid(x) = 0.5 * (1 + tanh(x/2)): one EUP op, overflow-safe, exact.
    o_ref[...] = (0.5 * (1.0 + jnp.tanh(0.5 * logits))).astype(o_ref.dtype)


@functools.partial(jax.jit, static_argnames=("tile_b", "use_bf16"))
def beginer_model_forward(x, params, tile_b=DEFAULT_TILE_B, use_bf16=True):
    """x: (B, 11) float32; params: list of (W(in,out), b(1,out)) pairs."""
    B, F = x.shape
    assert F == DIMS[0]

    # ---- padding / tiling policy ---------------------------------------
    # Pad batch to a multiple of 128 (store alignment), then pick the tile
    # from the requested size.  Ensure >= 2 tiles when possible so both v7x
    # TensorCores engage via the "parallel" grid axis.
    b128 = _round_up(B, 128)
    want = max(128, min(tile_b, b128))
    num_tiles = pl.cdiv(b128, want)
    if num_tiles == 1 and b128 >= 256:
        num_tiles = 2
    tile = _round_up(pl.cdiv(b128, num_tiles), 128)
    b_pad = tile * num_tiles
    if b_pad != B:
        x = jnp.pad(x, ((0, b_pad - B), (0, 0)))

    # ---- parameter preparation ------------------------------------------
    mxu_dtype = jnp.bfloat16 if use_bf16 else jnp.float32
    flat_params = []
    for w, b in params:
        flat_params.append(w.astype(mxu_dtype))     # MXU operand dtype
        flat_params.append(b.astype(jnp.float32))   # bias added in f32

    # Tiny weights/biases: VMEM-resident for the whole kernel, not streamed.
    resident = pl.BlockSpec(memory_space=pltpu.MemorySpace.VMEM)
    weight_specs = [resident] * len(flat_params)

    # Advisory cost hint for XLA's scheduler.
    layer_flops = 2 * sum(DIMS[i] * DIMS[i + 1] for i in range(len(DIMS) - 1))
    param_bytes = sum(int(p.size) * p.dtype.itemsize for p in flat_params)
    cost = pl.CostEstimate(
        flops=layer_flops * b_pad,
        transcendentals=b_pad,
        bytes_accessed=b_pad * (DIMS[0] + DIMS[-1]) * 4 + param_bytes,
    )

    out = pl.pallas_call(
        _mlp_kernel,
        out_shape=jax.ShapeDtypeStruct((b_pad, 1), jnp.float32),
        grid_spec=pltpu.PrefetchScalarGridSpec(
            num_scalar_prefetch=0,
            grid=(num_tiles,),
            in_specs=[pl.BlockSpec((tile, F), lambda i: (i, 0))]
                     + weight_specs,
            out_specs=pl.BlockSpec((tile, 1), lambda i: (i, 0)),
        ),
        compiler_params=pltpu.CompilerParams(
            dimension_semantics=("parallel",)),
        cost_estimate=cost,
    )(x, *flat_params)

    return out[:B]


def init_params(key):
    """Deterministic init mimicking nn.Linear's uniform(-1/sqrt(in), 1/sqrt(in)).

    All weights stored as (in, out) (transposed vs. nn.Linear); biases (1, out).
    """
    params = []
    for i in range(len(DIMS) - 1):
        fan_in, fan_out = DIMS[i], DIMS[i + 1]
        key, kw, kb = jax.random.split(key, 3)
        bound = 1.0 / (fan_in ** 0.5)
        w = jax.random.uniform(kw, (fan_in, fan_out), jnp.float32,
                               minval=-bound, maxval=bound)
        b = jax.random.uniform(kb, (1, fan_out), jnp.float32,
                               minval=-bound, maxval=bound)
        params.append((w, b))
    return params


def reference_forward(x, params):
    """Plain-JAX (f32) reference for a sanity check."""
    h = x
    n_layers = len(params)
    for idx, (w, b) in enumerate(params):
        h = h @ w + b
        if idx < n_layers - 1:
            h = jnp.where(h > 0, h, NEG_SLOPE * h)
    return jax.nn.sigmoid(h)


if __name__ == "__main__":
    key = jax.random.PRNGKey(0)
    kx, kp = jax.random.split(key)

    B = 100  # small batch; exercises the 128-padding / single-tile path
    x = jax.random.normal(kx, (B, DIMS[0]), dtype=jnp.float32)
    params = init_params(kp)
    ref = reference_forward(x, params)

    # Pure-f32 path: tight check against the reference.
    out_f32 = jax.block_until_ready(
        beginer_model_forward(x, params, use_bf16=False))
    assert out_f32.shape == (B, 1)
    assert jnp.allclose(out_f32, ref, atol=2e-3, rtol=2e-3), \
        "f32 path mismatch vs reference"

    # Default path (bf16 MXU operands, f32 accumulate): looser tolerance.
    out = jax.block_until_ready(beginer_model_forward(x, params))
    assert out.shape == (B, 1)
    assert jnp.allclose(out, ref, atol=2e-2, rtol=2e-2), \
        "bf16 path mismatch vs reference"

    print("KERNEL_OK")
</pallas_src>

<mosaic_0001>
module attributes {stable_mosaic.version = 11 : i64} {
  func.func @_mlp_kernel(%arg0: i32, %arg1: memref<128x11xf32, #tpu.memory_space<vmem>>, %arg2: memref<11x128xf32, #tpu.memory_space<vmem>>, %arg3: memref<1x128xf32, #tpu.memory_space<vmem>>, %arg4: memref<128x64xf32, #tpu.memory_space<vmem>>, %arg5: memref<1x64xf32, #tpu.memory_space<vmem>>, %arg6: memref<64x32xf32, #tpu.memory_space<vmem>>, %arg7: memref<1x32xf32, #tpu.memory_space<vmem>>, %arg8: memref<32x16xf32, #tpu.memory_space<vmem>>, %arg9: memref<1x16xf32, #tpu.memory_space<vmem>>, %arg10: memref<16x1xf32, #tpu.memory_space<vmem>>, %arg11: memref<1x1xf32, #tpu.memory_space<vmem>>, %arg12: memref<128x1xf32, #tpu.memory_space<vmem>>) attributes {dimension_semantics = [#tpu.dimension_semantics<parallel>], iteration_bounds = array<i64: 1>, scalar_prefetch = 0 : i64, scratch_operands = 0 : i64, tpu.core_type = #tpu.core_type<tc>, window_params = [{transform_indices = @transform_0, window_bounds = array<i64: 128, 11>}, {pipeline_mode = #tpu.pipeline_mode<synchronous>, transform_indices = @transform_1, window_bounds = array<i64: 11, 128>}, {pipeline_mode = #tpu.pipeline_mode<synchronous>, transform_indices = @transform_2, window_bounds = array<i64: 1, 128>}, {pipeline_mode = #tpu.pipeline_mode<synchronous>, transform_indices = @transform_3, window_bounds = array<i64: 128, 64>}, {pipeline_mode = #tpu.pipeline_mode<synchronous>, transform_indices = @transform_4, window_bounds = array<i64: 1, 64>}, {pipeline_mode = #tpu.pipeline_mode<synchronous>, transform_indices = @transform_5, window_bounds = array<i64: 64, 32>}, {pipeline_mode = #tpu.pipeline_mode<synchronous>, transform_indices = @transform_6, window_bounds = array<i64: 1, 32>}, {pipeline_mode = #tpu.pipeline_mode<synchronous>, transform_indices = @transform_7, window_bounds = array<i64: 32, 16>}, {pipeline_mode = #tpu.pipeline_mode<synchronous>, transform_indices = @transform_8, window_bounds = array<i64: 1, 16>}, {pipeline_mode = #tpu.pipeline_mode<synchronous>, transform_indices = @transform_9, window_bounds = array<i64: 16, 1>}, {pipeline_mode = #tpu.pipeline_mode<synchronous>, transform_indices = @transform_10, window_bounds = array<i64: 1, 1>}, {transform_indices = @transform_11, window_bounds = array<i64: 128, 1>}]} {
    %c0 = arith.constant 0 : index
    %c0_0 = arith.constant 0 : index
    %0 = vector.load %arg1[%c0, %c0_0] : memref<128x11xf32, #tpu.memory_space<vmem>>, vector<128x11xf32>
    %c0_1 = arith.constant 0 : index
    %c0_2 = arith.constant 0 : index
    %1 = vector.load %arg2[%c0_1, %c0_2] : memref<11x128xf32, #tpu.memory_space<vmem>>, vector<11x128xf32>
    %cst = arith.constant dense<0.000000e+00> : vector<128x128xf32>
    %2 = tpu.matmul %0, %1, %cst {dimension_numbers = #tpu.dot_dimension_numbers<[1], [0], [0], [1], [0, 0, 1, 1], [], []>} : vector<128x11xf32>, vector<11x128xf32>, vector<128x128xf32> -> vector<128x128xf32>
    %c0_3 = arith.constant 0 : index
    %c0_4 = arith.constant 0 : index
    %3 = vector.load %arg3[%c0_3, %c0_4] : memref<1x128xf32, #tpu.memory_space<vmem>>, vector<1x128xf32>
    %4 = vector.broadcast %3 : vector<1x128xf32> to vector<128x128xf32>
    %5 = arith.addf %2, %4 : vector<128x128xf32>
    %cst_5 = arith.constant 0.00999999977 : f32
    %6 = vector.broadcast %cst_5 : f32 to vector<128x128xf32>
    %7 = arith.mulf %6, %5 : vector<128x128xf32>
    %8 = arith.maximumf %5, %7 : vector<128x128xf32>
    %c0_6 = arith.constant 0 : index
    %c0_7 = arith.constant 0 : index
    %9 = vector.load %arg4[%c0_6, %c0_7] : memref<128x64xf32, #tpu.memory_space<vmem>>, vector<128x64xf32>
    %cst_8 = arith.constant dense<0.000000e+00> : vector<128x64xf32>
    %10 = tpu.matmul %8, %9, %cst_8 {dimension_numbers = #tpu.dot_dimension_numbers<[1], [0], [0], [1], [0, 0, 1, 1], [], []>} : vector<128x128xf32>, vector<128x64xf32>, vector<128x64xf32> -> vector<128x64xf32>
    %c0_9 = arith.constant 0 : index
    %c0_10 = arith.constant 0 : index
    %11 = vector.load %arg5[%c0_9, %c0_10] : memref<1x64xf32, #tpu.memory_space<vmem>>, vector<1x64xf32>
    %12 = vector.broadcast %11 : vector<1x64xf32> to vector<128x64xf32>
    %13 = arith.addf %10, %12 : vector<128x64xf32>
    %cst_11 = arith.constant 0.00999999977 : f32
    %14 = vector.broadcast %cst_11 : f32 to vector<128x64xf32>
    %15 = arith.mulf %14, %13 : vector<128x64xf32>
    %16 = arith.maximumf %13, %15 : vector<128x64xf32>
    %c0_12 = arith.constant 0 : index
    %c0_13 = arith.constant 0 : index
    %17 = vector.load %arg6[%c0_12, %c0_13] : memref<64x32xf32, #tpu.memory_space<vmem>>, vector<64x32xf32>
    %cst_14 = arith.constant dense<0.000000e+00> : vector<128x32xf32>
    %18 = tpu.matmul %16, %17, %cst_14 {dimension_numbers = #tpu.dot_dimension_numbers<[1], [0], [0], [1], [0, 0, 1, 1], [], []>} : vector<128x64xf32>, vector<64x32xf32>, vector<128x32xf32> -> vector<128x32xf32>
    %c0_15 = arith.constant 0 : index
    %c0_16 = arith.constant 0 : index
    %19 = vector.load %arg7[%c0_15, %c0_16] : memref<1x32xf32, #tpu.memory_space<vmem>>, vector<1x32xf32>
    %20 = vector.broadcast %19 : vector<1x32xf32> to vector<128x32xf32>
    %21 = arith.addf %18, %20 : vector<128x32xf32>
    %cst_17 = arith.constant 0.00999999977 : f32
    %22 = vector.broadcast %cst_17 : f32 to vector<128x32xf32>
    %23 = arith.mulf %22, %21 : vector<128x32xf32>
    %24 = arith.maximumf %21, %23 : vector<128x32xf32>
    %c0_18 = arith.constant 0 : index
    %c0_19 = arith.constant 0 : index
    %25 = vector.load %arg8[%c0_18, %c0_19] : memref<32x16xf32, #tpu.memory_space<vmem>>, vector<32x16xf32>
    %cst_20 = arith.constant dense<0.000000e+00> : vector<128x16xf32>
    %26 = tpu.matmul %24, %25, %cst_20 {dimension_numbers = #tpu.dot_dimension_numbers<[1], [0], [0], [1], [0, 0, 1, 1], [], []>} : vector<128x32xf32>, vector<32x16xf32>, vector<128x16xf32> -> vector<128x16xf32>
    %c0_21 = arith.constant 0 : index
    %c0_22 = arith.constant 0 : index
    %27 = vector.load %arg9[%c0_21, %c0_22] : memref<1x16xf32, #tpu.memory_space<vmem>>, vector<1x16xf32>
    %28 = vector.broadcast %27 : vector<1x16xf32> to vector<128x16xf32>
    %29 = arith.addf %26, %28 : vector<128x16xf32>
    %cst_23 = arith.constant 0.00999999977 : f32
    %30 = vector.broadcast %cst_23 : f32 to vector<128x16xf32>
    %31 = arith.mulf %30, %29 : vector<128x16xf32>
    %32 = arith.maximumf %29, %31 : vector<128x16xf32>
    %c0_24 = arith.constant 0 : index
    %c0_25 = arith.constant 0 : index
    %33 = vector.load %arg10[%c0_24, %c0_25] : memref<16x1xf32, #tpu.memory_space<vmem>>, vector<16x1xf32>
    %cst_26 = arith.constant dense<0.000000e+00> : vector<128x1xf32>
    %34 = tpu.matmul %32, %33, %cst_26 {dimension_numbers = #tpu.dot_dimension_numbers<[1], [0], [0], [1], [0, 0, 1, 1], [], []>} : vector<128x16xf32>, vector<16x1xf32>, vector<128x1xf32> -> vector<128x1xf32>
    %c0_27 = arith.constant 0 : index
    %c0_28 = arith.constant 0 : index
    %35 = vector.load %arg11[%c0_27, %c0_28] : memref<1x1xf32, #tpu.memory_space<vmem>>, vector<1x1xf32>
    %36 = vector.broadcast %35 : vector<1x1xf32> to vector<128x1xf32>
    %37 = arith.addf %34, %36 : vector<128x1xf32>
    %cst_29 = arith.constant 5.000000e-01 : f32
    %38 = vector.broadcast %cst_29 : f32 to vector<128x1xf32>
    %39 = arith.mulf %38, %37 : vector<128x1xf32>
    %40 = math.tanh %39 : vector<128x1xf32>
    %cst_30 = arith.constant 1.000000e+00 : f32
    %41 = vector.broadcast %cst_30 : f32 to vector<128x1xf32>
    %42 = arith.addf %41, %40 : vector<128x1xf32>
    %cst_31 = arith.constant 5.000000e-01 : f32
    %43 = vector.broadcast %cst_31 : f32 to vector<128x1xf32>
    %44 = arith.mulf %43, %42 : vector<128x1xf32>
    %c0_32 = arith.constant 0 : index
    %c0_33 = arith.constant 0 : index
    %45 = vector.load %arg12[%c0_32, %c0_33] : memref<128x1xf32, #tpu.memory_space<vmem>>, vector<128x1xf32>
    tpu.vector_store %arg12[%c0_32, %c0_33], %44 {strides = array<i32>} : memref<128x1xf32, #tpu.memory_space<vmem>>, vector<128x1xf32>,
    return
  }
  func.func @transform_0(%arg0: i32) -> (i32, i32) {
    %c0_i32 = arith.constant 0 : i32
    %c0_i32_0 = arith.constant 0 : i32
    return %arg0, %c0_i32 : i32, i32
  }
  func.func @transform_1(%arg0: i32) -> (i32, i32) {
    %c0_i32 = arith.constant 0 : i32
    %c0_i32_0 = arith.constant 0 : i32
    %c0_i32_1 = arith.constant 0 : i32
    return %c0_i32, %c0_i32_0 : i32, i32
  }
  func.func @transform_2(%arg0: i32) -> (i32, i32) {
    %c0_i32 = arith.constant 0 : i32
    %c0_i32_0 = arith.constant 0 : i32
    %c0_i32_1 = arith.constant 0 : i32
    return %c0_i32, %c0_i32_0 : i32, i32
  }
  func.func @transform_3(%arg0: i32) -> (i32, i32) {
    %c0_i32 = arith.constant 0 : i32
    %c0_i32_0 = arith.constant 0 : i32
    %c0_i32_1 = arith.constant 0 : i32
    return %c0_i32, %c0_i32_0 : i32, i32
  }
  func.func @transform_4(%arg0: i32) -> (i32, i32) {
    %c0_i32 = arith.constant 0 : i32
    %c0_i32_0 = arith.constant 0 : i32
    %c0_i32_1 = arith.constant 0 : i32
    return %c0_i32, %c0_i32_0 : i32, i32
  }
  func.func @transform_5(%arg0: i32) -> (i32, i32) {
    %c0_i32 = arith.constant 0 : i32
    %c0_i32_0 = arith.constant 0 : i32
    %c0_i32_1 = arith.constant 0 : i32
    return %c0_i32, %c0_i32_0 : i32, i32
  }
  func.func @transform_6(%arg0: i32) -> (i32, i32) {
    %c0_i32 = arith.constant 0 : i32
    %c0_i32_0 = arith.constant 0 : i32
    %c0_i32_1 = arith.constant 0 : i32
    return %c0_i32, %c0_i32_0 : i32, i32
  }
  func.func @transform_7(%arg0: i32) -> (i32, i32) {
    %c0_i32 = arith.constant 0 : i32
    %c0_i32_0 = arith.constant 0 : i32
    %c0_i32_1 = arith.constant 0 : i32
    return %c0_i32, %c0_i32_0 : i32, i32
  }
  func.func @transform_8(%arg0: i32) -> (i32, i32) {
    %c0_i32 = arith.constant 0 : i32
    %c0_i32_0 = arith.constant 0 : i32
    %c0_i32_1 = arith.constant 0 : i32
    return %c0_i32, %c0_i32_0 : i32, i32
  }
  func.func @transform_9(%arg0: i32) -> (i32, i32) {
    %c0_i32 = arith.constant 0 : i32
    %c0_i32_0 = arith.constant 0 : i32
    %c0_i32_1 = arith.constant 0 : i32
    return %c0_i32, %c0_i32_0 : i32, i32
  }
  func.func @transform_10(%arg0: i32) -> (i32, i32) {
    %c0_i32 = arith.constant 0 : i32
    %c0_i32_0 = arith.constant 0 : i32
    %c0_i32_1 = arith.constant 0 : i32
    return %c0_i32, %c0_i32_0 : i32, i32
  }
  func.func @transform_11(%arg0: i32) -> (i32, i32) {
    %c0_i32 = arith.constant 0 : i32
    %c0_i32_0 = arith.constant 0 : i32
    return %arg0, %c0_i32 : i32, i32
  }
}

</mosaic_0001>

<bundles_post_ra>
// kernel: beginer_model_forward.1
= control target key start
LH: loop header
LB: loop body
LE: loop exit
PB: predicated region body
PF: predicated region fallthrough
CT: control target
= control target key end

     0   :  { %vm114_vm0 = vcmask 1042432   ;;  %vm65_vm1 = vcmask 89088   ;;  %vm510_vm2 = vcmask 523264   ;;  %vm747_vm3 = vcmask 261120   ;;  %s2096_s1 = inlined_call_operand.vmem [shape: f32[11,128], index: 1, kind: input, shape index: {}]   ;;  %s2097_s0 = inlined_call_operand.vmem [shape: f32[128,11], index: 0, kind: input, shape index: {}]   ;;  %s2098_s3 = inlined_call_operand.vmem [shape: f32[128,64], index: 3, kind: input, shape index: {}]   ;;  %s2099_s5 = inlined_call_operand.vmem [shape: f32[64,32], index: 5, kind: input, shape index: {}]   ;;  %s2100_s2 = inlined_call_operand.vmem [shape: f32[1,128], index: 2, kind: input, shape index: {}]   ;;  %s2101_s7 = inlined_call_operand.vmem [shape: f32[32,16], index: 7, kind: input, shape index: {}]   ;;  %s2102_s4 = inlined_call_operand.vmem [shape: f32[1,64], index: 4, kind: input, shape index: {}]   ;;  %s2103_s9 = inlined_call_operand.vmem [shape: f32[16,1], index: 9, kind: input, shape index: {}]   ;;  %s2104_s6 = inlined_call_operand.vmem [shape: f32[1,32], index: 6, kind: input, shape index: {}]   ;;  %s2105_s10 = inlined_call_operand.<no memory space> [shape: f32[1,1], index: 10, kind: input, shape index: {}]   ;;  %s2106_s8 = inlined_call_operand.vmem [shape: f32[1,16], index: 8, kind: input, shape index: {}]   ;;  %s2107_s11 = inlined_call_operand.vmem [shape: f32[128,1], index: 11, kind: output, shape index: {}]  }
   0x1   :  { %v57_v0 = vld [vmem:[%s2096_s1 + $0x8] sm:$0x7]  ;;  %v56_v1 = vld [vmem:[%s2096_s1] sm:$0xff]  ;;  %v42_v4 = vld [vmem:[%s2097_s0 + $0x10] sm:$0xff]  ;;  %vm982_vm4 = vcmask 130048   ;;  %vm1240_vm5 = vcmask 7168  }
   0x2   :  { %v40_v2 = vld [vmem:[%s2097_s0] sm:$0xff]  ;;  %1443 = vmatprep.subr.msk.mxu0 %vm114_vm0, %v57_v0  ;;  %v41_v3 = vld [vmem:[%s2097_s0 + $0x8] sm:$0xff]  ;;  %v43_v5 = vld [vmem:[%s2097_s0 + $0x18] sm:$0xff] }
   0x3   :  { %1447 = vmatprep.mubr.msk.f32.mxu0 %vm65_vm1, %v40_v2  ;;  %1444 = vmatpush3.msk.msra.mxu0 %vm114_vm0, %v57_v0  ;;  %v310_v6 = vld [vmem:[%s2098_s3 + $0x78] sm:$0xff]  ;;  %v309_v7 = vld [vmem:[%s2098_s3 + $0x70] sm:$0xff]  ;;  %v44_v8 = vld [vmem:[%s2097_s0 + $0x20] sm:$0xff] }
   0x4   :  { %1445 = vmatprep.subr.mxu0 %v56_v1  ;;  %1471 = vmatprep.subr.mxu1 %v310_v6  ;;  %v308_v9 = vld [vmem:[%s2098_s3 + $0x68] sm:$0xff]  ;;  %v307_v11 = vld [vmem:[%s2098_s3 + $0x60] sm:$0xff]  ;;  %v46_v12 = vld [vmem:[%s2097_s0 + $0x30] sm:$0xff] }
   0x5   :  { %1446 = vmatpush3.msra.mxu0 %v56_v1  ;;  %1472 = vmatpush3.msra.mxu1 %v310_v6  ;;  %v45_v10 = vld [vmem:[%s2097_s0 + $0x28] sm:$0xff]  ;;  %v306_v13 = vld [vmem:[%s2098_s3 + $0x58] sm:$0xff]  ;;  %v305_v15 = vld [vmem:[%s2098_s3 + $0x50] sm:$0xff] }
   0x6   :  { %1448 = vmatmul.mubr.msk.f32.vlgmr.msra.gmra.mxu0 %vm65_vm1, %v41_v3  ;;  %1473 = vmatprep.subr.mxu1 %v309_v7  ;;  %v47_v14 = vld [vmem:[%s2097_s0 + $0x38] sm:$0xff]  ;;  %v48_v16 = vld [vmem:[%s2097_s0 + $0x40] sm:$0xff]  ;;  %v304_v17 = vld [vmem:[%s2098_s3 + $0x48] sm:$0xff] }
   0x7   :  { %1450 = vmatprep.mubr.msk.f32.mxu0 %vm65_vm1, %v42_v4  ;;  %1474 = vmatpush3.msra.mxu1 %v309_v7  ;;  %v49_v18 = vld [vmem:[%s2097_s0 + $0x48] sm:$0xff]  ;;  %v303_v19 = vld [vmem:[%s2098_s3 + $0x40] sm:$0xff]  ;;  %v50_v20 = vld [vmem:[%s2097_s0 + $0x50] sm:$0xff] }
   0x8   :  { %1475 = vmatprep.subr.mxu1 %v308_v9  ;;  %v302_v21 = vld [vmem:[%s2098_s3 + $0x38] sm:$0xff]  ;;  %v301_v23 = vld [vmem:[%s2098_s3 + $0x30] sm:$0xff]  ;;  %v52_v24 = vld [vmem:[%s2097_s0 + $0x60] sm:$0xff] }
   0x9   :  { %1476 = vmatpush3.msra.mxu1 %v308_v9  ;;  %v51_v22 = vld [vmem:[%s2097_s0 + $0x58] sm:$0xff]  ;;  %v300_v25 = vld [vmem:[%s2098_s3 + $0x28] sm:$0xff]  ;;  %v54_v27 = vld [vmem:[%s2097_s0 + $0x70] sm:$0xff] }
   0xa   :  { %1451 = vmatmul.mubr.msk.f32.gmra.mxu0 %vm65_vm1, %v43_v5  ;;  %1477 = vmatprep.subr.mxu1 %v307_v11  ;;  %v53_v26 = vld [vmem:[%s2097_s0 + $0x68] sm:$0xff]  ;;  %v55_v28 = vld [vmem:[%s2097_s0 + $0x78] sm:$0xff]  ;;  %v299_v29 = vld [vmem:[%s2098_s3 + $0x20] sm:$0xff] }
   0xb   :  { %1453 = vmatprep.mubr.msk.f32.mxu0 %vm65_vm1, %v44_v8  ;;  %1478 = vmatpush3.msra.mxu1 %v307_v11  ;;  %v298_v30 = vld [vmem:[%s2098_s3 + $0x18] sm:$0xff]  ;;  %v297_v31 = vld [vmem:[%s2098_s3 + $0x10] sm:$0xff]  ;;  %v296_v32 = vld [vmem:[%s2098_s3 + $0x8] sm:$0xff] }
   0xc   :  { %1479 = vmatprep.subr.mxu1 %v306_v13  ;;  %v295_v33 = vld [vmem:[%s2098_s3] sm:$0xff]  ;;  %v502_v34 = vld [vmem:[%s2099_s5 + $0x38] sm:$0xff]  ;;  %v501_v35 = vld [vmem:[%s2099_s5 + $0x30] sm:$0xff] }
   0xd   :  { %1480 = vmatpush3.msra.mxu1 %v306_v13  ;;  %1527 = vmatprep.subr.mxu0 %v502_v34  ;;  %v500_v36 = vld [vmem:[%s2099_s5 + $0x28] sm:$0xff]  ;;  %v499_v37 = vld [vmem:[%s2099_s5 + $0x20] sm:$0xff]  ;;  %v498_v38 = vld [vmem:[%s2099_s5 + $0x18] sm:$0xff] }
   0xe   :  { %1454 = vmatmul.mubr.msk.f32.gmra.mxu0 %vm65_vm1, %v45_v10  ;;  %1481 = vmatprep.subr.mxu1 %v305_v15  ;;  %v497_v39 = vld [vmem:[%s2099_s5 + $0x10] sm:$0xff]  ;;  %v1858_v40 = vld [vmem:[%s2100_s2] ss:$0 sm:$0xff] }
   0xf   :  { %1456 = vmatprep.mubr.msk.f32.mxu0 %vm65_vm1, %v46_v12  ;;  %1482 = vmatpush3.msra.mxu1 %v305_v15 }
  0x10   :  { %1483 = vmatprep.subr.mxu1 %v304_v17  ;;  %1528 = vmatpush3.msra.mxu0 %v502_v34 }
  0x11   :  { %1484 = vmatpush3.msra.mxu1 %v304_v17  ;;  %1529 = vmatprep.subr.mxu0 %v501_v35 }
  0x12   :  { %1457 = vmatmul.mubr.msk.f32.gmra.mxu0 %vm65_vm1, %v47_v14  ;;  %1485 = vmatprep.subr.mxu1 %v303_v19 }
  0x13   :  { %1459 = vmatprep.mubr.msk.f32.mxu0 %vm65_vm1, %v48_v16  ;;  %1486 = vmatpush3.msra.mxu1 %v303_v19 }
  0x14   :  { %1487 = vmatprep.subr.mxu1 %v302_v21  ;;  %1530 = vmatpush3.msra.mxu0 %v501_v35 }
  0x15   :  { %1488 = vmatpush3.msra.mxu1 %v302_v21  ;;  %1531 = vmatprep.subr.mxu0 %v500_v36 }
  0x16   :  { %1460 = vmatmul.mubr.msk.f32.gmra.mxu0 %vm65_vm1, %v49_v18  ;;  %1489 = vmatprep.subr.mxu1 %v301_v23 }
  0x17   :  { %1462 = vmatprep.mubr.msk.f32.mxu0 %vm65_vm1, %v50_v20  ;;  %1490 = vmatpush3.msra.mxu1 %v301_v23 }
  0x18   :  { %1491 = vmatprep.subr.mxu1 %v300_v25  ;;  %1532 = vmatpush3.msra.mxu0 %v500_v36 }
  0x19   :  { %1492 = vmatpush3.msra.mxu1 %v300_v25  ;;  %1533 = vmatprep.subr.mxu0 %v499_v37 }
  0x1a   :  { %1463 = vmatmul.mubr.msk.f32.gmra.mxu0 %vm65_vm1, %v51_v22  ;;  %1493 = vmatprep.subr.mxu1 %v299_v29 }
  0x1b   :  { %1465 = vmatprep.mubr.msk.f32.mxu0 %vm65_vm1, %v52_v24  ;;  %1494 = vmatpush3.msra.mxu1 %v299_v29 }
  0x1c   :  { %1495 = vmatprep.subr.mxu1 %v298_v30  ;;  %1534 = vmatpush3.msra.mxu0 %v499_v37 }
  0x1d   :  { %1496 = vmatpush3.msra.mxu1 %v298_v30  ;;  %1535 = vmatprep.subr.mxu0 %v498_v38 }
  0x1e   :  { %1466 = vmatmul.mubr.msk.f32.gmra.mxu0 %vm65_vm1, %v53_v26  ;;  %1497 = vmatprep.subr.mxu1 %v297_v31 }
  0x1f   :  { %1468 = vmatprep.mubr.msk.f32.mxu0 %vm65_vm1, %v54_v27  ;;  %1498 = vmatpush3.msra.mxu1 %v297_v31 }
  0x20   :  { %1499 = vmatprep.subr.mxu1 %v296_v32  ;;  %1536 = vmatpush3.msra.mxu0 %v498_v38 }
  0x21   :  { %1500 = vmatpush3.msra.mxu1 %v296_v32  ;;  %1537 = vmatprep.subr.mxu0 %v497_v39 }
  0x22   :  { %1469 = vmatmul.mubr.msk.f32.gmra.mxu0 %vm65_vm1, %v55_v28  ;;  %1501 = vmatprep.subr.mxu1 %v295_v33 }
  0x23   :  { %1502 = vmatpush3.msra.mxu1 %v295_v33  ;;  %1538 = vmatpush3.msra.mxu0 %v497_v39 }
  0xc6   :  { %v1449_v41 = vpop.f32.mrf.mxu0 }
  0xc7   :  { %v190_v42 = vadd.f32 %v1449_v41, %v1858_v40 }
  0xc8   :  { %v184_v43 = vpop.f32.mrf.mxu0 }
  0xc9   :  { %v185_v44 = vadd.f32 %v1858_v40, %v184_v43  ;;  %v264_v45 = vmul.f32 0.01, %v190_v42  ;;  %v495_v43 = vld [vmem:[%s2099_s5] sm:$0xff] }
  0xca   :  { %v1452_v46 = vpop.f32.mrf.mxu0 }
  0xcb   :  { %v200_v47 = vadd.f32 %v1452_v46, %v1858_v40  ;;  %v263_v48 = vmul.f32 0.01, %v185_v44  ;;  %v280_v52 = vmax.f32 %v190_v42, %v264_v45  ;;  %v496_v42 = vld [vmem:[%s2099_s5 + $0x8] sm:$0xff]  ;;  %v1894_v46 = vld [vmem:[%s2102_s4] ss:$0 sm:$0xff] }
  0xcc   :  { %v194_v49 = vpop.f32.mrf.mxu0  ;;  %1539 = vmatprep.subr.mxu0 %v496_v42  ;;  %v737_v45 = vld [vmem:[%s2101_s7 + $0x8] sm:$0xff] }
  0xcd   :  { %v195_v50 = vadd.f32 %v1858_v40, %v194_v49  ;;  %v279_v51 = vmax.f32 %v185_v44, %v263_v48  ;;  %v266_v53 = vmul.f32 0.01, %v200_v47  ;;  %1540 = vmatpush3.msra.mxu0 %v496_v42  ;;  %v738_v44 = vld [vmem:[%s2101_s7 + $0x10] sm:$0xff] }
  0xce   :  { %v1455_v54 = vpop.f32.mrf.mxu0  ;;  %1541 = vmatprep.subr.mxu0 %v495_v43 }
  0xcf   :  { %v265_v55 = vmul.f32 0.01, %v195_v50  ;;  %v210_v56 = vadd.f32 %v1455_v54, %v1858_v40  ;;  %1503 = vmatprep.mubr.f32.mxu1 %v279_v51  ;;  %v282_v60 = vmax.f32 %v200_v47, %v266_v53  ;;  %1542 = vmatpush3.msra.mxu0 %v495_v43 }
  0xd0   :  { %v204_v57 = vpop.f32.mrf.mxu0  ;;  %1504 = vmatmul.mubr.f32.vlgmr.msra.gmra.mxu1 %v280_v52 }
  0xd1   :  { %v281_v58 = vmax.f32 %v195_v50, %v265_v55  ;;  %v205_v59 = vadd.f32 %v1858_v40, %v204_v57  ;;  %v268_v61 = vmul.f32 0.01, %v210_v56 }
  0xd2   :  { %v1458_v62 = vpop.f32.mrf.mxu0 }
  0xd3   :  { %v267_v63 = vmul.f32 0.01, %v205_v59  ;;  %v220_v0 = vadd.f32 %v1458_v62, %v1858_v40  ;;  %1506 = vmatprep.mubr.f32.mxu1 %v281_v58  ;;  %v284_v4 = vmax.f32 %v210_v56, %v268_v61 }
  0xd4   :  { %v214_v1 = vpop.f32.mrf.mxu0  ;;  %1507 = vmatmul.mubr.f32.gmra.mxu1 %v282_v60 }
  0xd5   :  { %v283_v2 = vmax.f32 %v205_v59, %v267_v63  ;;  %v215_v3 = vadd.f32 %v1858_v40, %v214_v1  ;;  %v270_v5 = vmul.f32 0.01, %v220_v0 }
  0xd6   :  { %v1461_v6 = vpop.f32.mrf.mxu0 }
  0xd7   :  { %v269_v7 = vmul.f32 0.01, %v215_v3  ;;  %v230_v8 = vadd.f32 %v1461_v6, %v1858_v40  ;;  %1509 = vmatprep.mubr.f32.mxu1 %v283_v2  ;;  %v286_v12 = vmax.f32 %v220_v0, %v270_v5 }
  0xd8   :  { %v224_v9 = vpop.f32.mrf.mxu0  ;;  %1510 = vmatmul.mubr.f32.gmra.mxu1 %v284_v4 }
  0xd9   :  { %v285_v10 = vmax.f32 %v215_v3, %v269_v7  ;;  %v225_v11 = vadd.f32 %v1858_v40, %v224_v9  ;;  %v272_v13 = vmul.f32 0.01, %v230_v8 }
  0xda   :  { %v1464_v14 = vpop.f32.mrf.mxu0 }
  0xdb   :  { %v271_v15 = vmul.f32 0.01, %v225_v11  ;;  %v240_v16 = vadd.f32 %v1464_v14, %v1858_v40  ;;  %1512 = vmatprep.mubr.f32.mxu1 %v285_v10  ;;  %v288_v20 = vmax.f32 %v230_v8, %v272_v13 }
  0xdc   :  { %v234_v17 = vpop.f32.mrf.mxu0  ;;  %1513 = vmatmul.mubr.f32.gmra.mxu1 %v286_v12 }
  0xdd   :  { %v287_v18 = vmax.f32 %v225_v11, %v271_v15  ;;  %v235_v19 = vadd.f32 %v1858_v40, %v234_v17  ;;  %v274_v21 = vmul.f32 0.01, %v240_v16 }
  0xde   :  { %v1467_v22 = vpop.f32.mrf.mxu0 }
  0xdf   :  { %v273_v23 = vmul.f32 0.01, %v235_v19  ;;  %v250_v24 = vadd.f32 %v1467_v22, %v1858_v40  ;;  %1515 = vmatprep.mubr.f32.mxu1 %v287_v18  ;;  %v290_v28 = vmax.f32 %v240_v16, %v274_v21 }
  0xe0   :  { %v244_v25 = vpop.f32.mrf.mxu0  ;;  %1516 = vmatmul.mubr.f32.gmra.mxu1 %v288_v20 }
  0xe1   :  { %v289_v26 = vmax.f32 %v235_v19, %v273_v23  ;;  %v245_v27 = vadd.f32 %v1858_v40, %v244_v25  ;;  %v276_v29 = vmul.f32 0.01, %v250_v24 }
  0xe2   :  { %v1470_v30 = vpop.f32.mrf.mxu0 }
  0xe3   :  { %v275_v31 = vmul.f32 0.01, %v245_v27  ;;  %v260_v32 = vadd.f32 %v1470_v30, %v1858_v40  ;;  %1518 = vmatprep.mubr.f32.mxu1 %v289_v26  ;;  %v292_v36 = vmax.f32 %v250_v24, %v276_v29 }
  0xe4   :  { %v254_v33 = vpop.f32.mrf.mxu0  ;;  %1519 = vmatmul.mubr.f32.gmra.mxu1 %v290_v28 }
  0xe5   :  { %v291_v34 = vmax.f32 %v245_v27, %v275_v31  ;;  %v255_v35 = vadd.f32 %v1858_v40, %v254_v33  ;;  %v278_v37 = vmul.f32 0.01, %v260_v32  ;;  %v739_v40 = vld [vmem:[%s2101_s7 + $0x18] sm:$0xff] }
  0xe6   :  { %1567 = vmatprep.subr.mxu1 %v739_v40 }
  0xe7   :  { %v277_v38 = vmul.f32 0.01, %v255_v35  ;;  %1521 = vmatprep.mubr.f32.mxu1 %v291_v34  ;;  %v294_v41 = vmax.f32 %v260_v32, %v278_v37  ;;  %1568 = vmatpush3.msra.mxu1 %v739_v40 }
  0xe8   :  { %1522 = vmatmul.mubr.f32.gmra.mxu1 %v292_v36  ;;  %1569 = vmatprep.subr.mxu1 %v738_v44 }
  0xe9   :  { %v293_v39 = vmax.f32 %v255_v35, %v277_v38  ;;  %1570 = vmatpush3.msra.mxu1 %v738_v44 }
  0xea   :  { %1571 = vmatprep.subr.mxu1 %v737_v45 }
  0xeb   :  { %1524 = vmatprep.mubr.f32.mxu1 %v293_v39  ;;  %1572 = vmatpush3.msra.mxu1 %v737_v45 }
  0xec   :  { %1525 = vmatmul.mubr.f32.gmra.mxu1 %v294_v41 }
 0x190   :  { %v1505_v47 = vpop.f32.mrf.mxu1 }
 0x191   :  { %v390_v48 = vadd.f32 %v1505_v47, %v1894_v46 }
 0x192   :  { %v384_v49 = vpop.f32.mrf.mxu1 }
 0x193   :  { %v385_v50 = vadd.f32 %v1894_v46, %v384_v49  ;;  %v464_v51 = vmul.f32 0.01, %v390_v48  ;;  %v973_v49 = vld [vmem:[%s2103_s9] sm:$0xff] }
 0x194   :  { %v1508_v52 = vpop.f32.mrf.mxu1 }
 0x195   :  { %v463_v53 = vmul.f32 0.01, %v385_v50  ;;  %v400_v54 = vadd.f32 %v1508_v52, %v1894_v46  ;;  %v480_v58 = vmax.f32 %v390_v48, %v464_v51  ;;  %v736_v48 = vld [vmem:[%s2101_s7] sm:$0xff] }
 0x196   :  { %v394_v55 = vpop.f32.mrf.mxu1  ;;  %1573 = vmatprep.subr.mxu1 %v736_v48 }
 0x197   :  { %v479_v56 = vmax.f32 %v385_v50, %v463_v53  ;;  %v395_v57 = vadd.f32 %v1894_v46, %v394_v55  ;;  %v466_v59 = vmul.f32 0.01, %v400_v54  ;;  %1574 = vmatpush3.msra.mxu1 %v736_v48  ;;  %v1940_v50 = vld [vmem:[%s2104_s6] ss:$0 sm:$0xff] }
 0x198   :  { %v1511_v60 = vpop.f32.mrf.mxu1 }
 0x199   :  { %v465_v61 = vmul.f32 0.01, %v395_v57  ;;  %v410_v62 = vadd.f32 %v1511_v60, %v1894_v46  ;;  %1543 = vmatprep.mubr.msk.f32.mxu0 %vm510_vm2, %v479_v56  ;;  %v482_v2 = vmax.f32 %v400_v54, %v466_v59 }
 0x19a   :  { %v404_v63 = vpop.f32.mrf.mxu1  ;;  %1544 = vmatmul.mubr.msk.f32.vlgmr.msra.gmra.mxu0 %vm510_vm2, %v480_v58 }
 0x19b   :  { %v481_v0 = vmax.f32 %v395_v57, %v465_v61  ;;  %v405_v1 = vadd.f32 %v1894_v46, %v404_v63  ;;  %v468_v3 = vmul.f32 0.01, %v410_v62 }
 0x19c   :  { %v1514_v4 = vpop.f32.mrf.mxu1 }
 0x19d   :  { %v467_v5 = vmul.f32 0.01, %v405_v1  ;;  %v420_v6 = vadd.f32 %v1514_v4, %v1894_v46  ;;  %1546 = vmatprep.mubr.msk.f32.mxu0 %vm510_vm2, %v481_v0  ;;  %v484_v10 = vmax.f32 %v410_v62, %v468_v3 }
 0x19e   :  { %v414_v7 = vpop.f32.mrf.mxu1  ;;  %1547 = vmatmul.mubr.msk.f32.gmra.mxu0 %vm510_vm2, %v482_v2 }
 0x19f   :  { %v483_v8 = vmax.f32 %v405_v1, %v467_v5  ;;  %v415_v9 = vadd.f32 %v1894_v46, %v414_v7  ;;  %v470_v11 = vmul.f32 0.01, %v420_v6 }
 0x1a0   :  { %v1517_v12 = vpop.f32.mrf.mxu1 }
 0x1a1   :  { %v469_v13 = vmul.f32 0.01, %v415_v9  ;;  %v430_v14 = vadd.f32 %v1517_v12, %v1894_v46  ;;  %1549 = vmatprep.mubr.msk.f32.mxu0 %vm510_vm2, %v483_v8  ;;  %v486_v18 = vmax.f32 %v420_v6, %v470_v11 }
 0x1a2   :  { %v424_v15 = vpop.f32.mrf.mxu1  ;;  %1550 = vmatmul.mubr.msk.f32.gmra.mxu0 %vm510_vm2, %v484_v10 }
 0x1a3   :  { %v485_v16 = vmax.f32 %v415_v9, %v469_v13  ;;  %v425_v17 = vadd.f32 %v1894_v46, %v424_v15  ;;  %v472_v19 = vmul.f32 0.01, %v430_v14 }
 0x1a4   :  { %v1520_v20 = vpop.f32.mrf.mxu1 }
 0x1a5   :  { %v471_v21 = vmul.f32 0.01, %v425_v17  ;;  %v440_v22 = vadd.f32 %v1520_v20, %v1894_v46  ;;  %1552 = vmatprep.mubr.msk.f32.mxu0 %vm510_vm2, %v485_v16  ;;  %v488_v26 = vmax.f32 %v430_v14, %v472_v19 }
 0x1a6   :  { %v434_v23 = vpop.f32.mrf.mxu1  ;;  %1553 = vmatmul.mubr.msk.f32.gmra.mxu0 %vm510_vm2, %v486_v18 }
 0x1a7   :  { %v487_v24 = vmax.f32 %v425_v17, %v471_v21  ;;  %v435_v25 = vadd.f32 %v1894_v46, %v434_v23  ;;  %v474_v27 = vmul.f32 0.01, %v440_v22 }
 0x1a8   :  { %v1523_v28 = vpop.f32.mrf.mxu1 }
 0x1a9   :  { %v473_v29 = vmul.f32 0.01, %v435_v25  ;;  %v450_v30 = vadd.f32 %v1523_v28, %v1894_v46  ;;  %1555 = vmatprep.mubr.msk.f32.mxu0 %vm510_vm2, %v487_v24  ;;  %v490_v34 = vmax.f32 %v440_v22, %v474_v27 }
 0x1aa   :  { %v444_v31 = vpop.f32.mrf.mxu1  ;;  %1556 = vmatmul.mubr.msk.f32.gmra.mxu0 %vm510_vm2, %v488_v26 }
 0x1ab   :  { %v489_v32 = vmax.f32 %v435_v25, %v473_v29  ;;  %v445_v33 = vadd.f32 %v1894_v46, %v444_v31  ;;  %v476_v35 = vmul.f32 0.01, %v450_v30 }
 0x1ac   :  { %v1526_v36 = vpop.f32.mrf.mxu1 }
 0x1ad   :  { %v475_v37 = vmul.f32 0.01, %v445_v33  ;;  %v460_v38 = vadd.f32 %v1526_v36, %v1894_v46  ;;  %1558 = vmatprep.mubr.msk.f32.mxu0 %vm510_vm2, %v489_v32  ;;  %v492_v43 = vmax.f32 %v450_v30, %v476_v35 }
 0x1ae   :  { %v454_v39 = vpop.f32.mrf.mxu1  ;;  %1559 = vmatmul.mubr.msk.f32.gmra.mxu0 %vm510_vm2, %v490_v34 }
 0x1af   :  { %v491_v41 = vmax.f32 %v445_v33, %v475_v37  ;;  %v455_v42 = vadd.f32 %v1894_v46, %v454_v39  ;;  %v478_v40 = vmul.f32 0.01, %v460_v38  ;;  %v974_v46 = vld [vmem:[%s2103_s9 + $0x8] sm:$0xff] }
 0x1b0   :  { %1599 = vmatprep.subr.mxu0 %v974_v46 }
 0x1b1   :  { %v477_v44 = vmul.f32 0.01, %v455_v42  ;;  %1561 = vmatprep.mubr.msk.f32.mxu0 %vm510_vm2, %v491_v41  ;;  %v494_v47 = vmax.f32 %v460_v38, %v478_v40  ;;  %1600 = vmatpush3.msra.mxu0 %v974_v46 }
 0x1b2   :  { %1562 = vmatmul.mubr.msk.f32.gmra.mxu0 %vm510_vm2, %v492_v43  ;;  %1601 = vmatprep.subr.mxu0 %v973_v49 }
 0x1b3   :  { %v493_v45 = vmax.f32 %v455_v42, %v477_v44  ;;  %1602 = vmatpush3.msra.mxu0 %v973_v49 }
 0x1b5   :  { %1564 = vmatprep.mubr.msk.f32.mxu0 %vm510_vm2, %v493_v45 }
 0x1b6   :  { %1565 = vmatmul.mubr.msk.f32.gmra.mxu0 %vm510_vm2, %v494_v47 }
 0x25a   :  { %v1545_v51 = vpop.f32.mrf.mxu0 }
 0x25b   :  { %v631_v52 = vadd.f32 %v1545_v51, %v1940_v50 }
 0x25c   :  { %v625_v53 = vpop.f32.mrf.mxu0 }
 0x25d   :  { %v626_v54 = vadd.f32 %v1940_v50, %v625_v53  ;;  %v705_v55 = vmul.f32 0.01, %v631_v52 }
 0x25e   :  { %v1548_v56 = vpop.f32.mrf.mxu0 }
 0x25f   :  { %v704_v57 = vmul.f32 0.01, %v626_v54  ;;  %v641_v58 = vadd.f32 %v1548_v56, %v1940_v50  ;;  %v721_v62 = vmax.f32 %v631_v52, %v705_v55  ;;  %v16_v52 = vstv %s2105_s10 }
 0x260   :  { %v635_v59 = vpop.f32.mrf.mxu0  ;;  %17 = vst [vmem:[#allocation2] sm:$0x1] %v16_v52 }
 0x261   :  { %v720_v60 = vmax.f32 %v626_v54, %v704_v57  ;;  %v636_v61 = vadd.f32 %v1940_v50, %v635_v59  ;;  %v707_v63 = vmul.f32 0.01, %v641_v58 }
 0x262   :  { %v1551_v0 = vpop.f32.mrf.mxu0 }
 0x263   :  { %v706_v1 = vmul.f32 0.01, %v636_v61  ;;  %v651_v2 = vadd.f32 %v1551_v0, %v1940_v50  ;;  %1575 = vmatprep.mubr.msk.f32.mxu1 %vm747_vm3, %v720_v60  ;;  %v723_v6 = vmax.f32 %v641_v58, %v707_v63 }
 0x264   :  { %v645_v3 = vpop.f32.mrf.mxu0  ;;  %1576 = vmatmul.mubr.msk.f32.vlgmr.msra.gmra.mxu1 %vm747_vm3, %v721_v62 }
 0x265   :  { %v722_v4 = vmax.f32 %v636_v61, %v706_v1  ;;  %v646_v5 = vadd.f32 %v1940_v50, %v645_v3  ;;  %v709_v7 = vmul.f32 0.01, %v651_v2 }
 0x266   :  { %v1554_v8 = vpop.f32.mrf.mxu0 }
 0x267   :  { %v708_v9 = vmul.f32 0.01, %v646_v5  ;;  %v661_v10 = vadd.f32 %v1554_v8, %v1940_v50  ;;  %1578 = vmatprep.mubr.msk.f32.mxu1 %vm747_vm3, %v722_v4  ;;  %v725_v14 = vmax.f32 %v651_v2, %v709_v7 }
 0x268   :  { %v655_v11 = vpop.f32.mrf.mxu0  ;;  %1579 = vmatmul.mubr.msk.f32.gmra.mxu1 %vm747_vm3, %v723_v6 }
 0x269   :  { %v724_v12 = vmax.f32 %v646_v5, %v708_v9  ;;  %v656_v13 = vadd.f32 %v1940_v50, %v655_v11  ;;  %v711_v15 = vmul.f32 0.01, %v661_v10 }
 0x26a   :  { %v1557_v16 = vpop.f32.mrf.mxu0 }
 0x26b   :  { %v710_v17 = vmul.f32 0.01, %v656_v13  ;;  %v671_v18 = vadd.f32 %v1557_v16, %v1940_v50  ;;  %1581 = vmatprep.mubr.msk.f32.mxu1 %vm747_vm3, %v724_v12  ;;  %v727_v22 = vmax.f32 %v661_v10, %v711_v15 }
 0x26c   :  { %v665_v19 = vpop.f32.mrf.mxu0  ;;  %1582 = vmatmul.mubr.msk.f32.gmra.mxu1 %vm747_vm3, %v725_v14 }
 0x26d   :  { %v726_v20 = vmax.f32 %v656_v13, %v710_v17  ;;  %v666_v21 = vadd.f32 %v1940_v50, %v665_v19  ;;  %v713_v23 = vmul.f32 0.01, %v671_v18 }
 0x26e   :  { %v1560_v24 = vpop.f32.mrf.mxu0 }
 0x26f   :  { %v712_v25 = vmul.f32 0.01, %v666_v21  ;;  %v681_v26 = vadd.f32 %v1560_v24, %v1940_v50  ;;  %1584 = vmatprep.mubr.msk.f32.mxu1 %vm747_vm3, %v726_v20  ;;  %v729_v30 = vmax.f32 %v671_v18, %v713_v23 }
 0x270   :  { %v675_v27 = vpop.f32.mrf.mxu0  ;;  %1585 = vmatmul.mubr.msk.f32.gmra.mxu1 %vm747_vm3, %v727_v22 }
 0x271   :  { %v728_v28 = vmax.f32 %v666_v21, %v712_v25  ;;  %v676_v29 = vadd.f32 %v1940_v50, %v675_v27  ;;  %v715_v31 = vmul.f32 0.01, %v681_v26 }
 0x272   :  { %v1563_v32 = vpop.f32.mrf.mxu0 }
 0x273   :  { %v714_v33 = vmul.f32 0.01, %v676_v29  ;;  %v691_v34 = vadd.f32 %v1563_v32, %v1940_v50  ;;  %1587 = vmatprep.mubr.msk.f32.mxu1 %vm747_vm3, %v728_v28  ;;  %v731_v38 = vmax.f32 %v681_v26, %v715_v31 }
 0x274   :  { %v685_v35 = vpop.f32.mrf.mxu0  ;;  %1588 = vmatmul.mubr.msk.f32.gmra.mxu1 %vm747_vm3, %v729_v30 }
 0x275   :  { %v730_v36 = vmax.f32 %v676_v29, %v714_v33  ;;  %v686_v37 = vadd.f32 %v1940_v50, %v685_v35  ;;  %v717_v39 = vmul.f32 0.01, %v691_v34 }
 0x276   :  { %v1566_v41 = vpop.f32.mrf.mxu0 }
 0x277   :  { %v716_v42 = vmul.f32 0.01, %v686_v37  ;;  %v701_v43 = vadd.f32 %v1566_v41, %v1940_v50  ;;  %1590 = vmatprep.mubr.msk.f32.mxu1 %vm747_vm3, %v730_v36  ;;  %v733_v47 = vmax.f32 %v691_v34, %v717_v39 }
 0x278   :  { %v695_v40 = vpop.f32.mrf.mxu0  ;;  %1591 = vmatmul.mubr.msk.f32.gmra.mxu1 %vm747_vm3, %v731_v38 }
 0x279   :  { %v732_v44 = vmax.f32 %v686_v37, %v716_v42  ;;  %v696_v45 = vadd.f32 %v1940_v50, %v695_v40  ;;  %v719_v48 = vmul.f32 0.01, %v701_v43  ;;  %v1980_v50 = vld [vmem:[%s2106_s8] ss:$0 sm:$0xff] }
 0x27b   :  { %v718_v46 = vmul.f32 0.01, %v696_v45  ;;  %1593 = vmatprep.mubr.msk.f32.mxu1 %vm747_vm3, %v732_v44  ;;  %v735_v51 = vmax.f32 %v701_v43, %v719_v48 }
 0x27c   :  { %1594 = vmatmul.mubr.msk.f32.gmra.mxu1 %vm747_vm3, %v733_v47 }
 0x27d   :  { %v734_v49 = vmax.f32 %v696_v45, %v718_v46 }
 0x27f   :  { %1596 = vmatprep.mubr.msk.f32.mxu1 %vm747_vm3, %v734_v49 }
 0x280   :  { %1597 = vmatmul.mubr.msk.f32.gmra.mxu1 %vm747_vm3, %v735_v51 }
 0x324   :  { %v1577_v53 = vpop.f32.mrf.mxu1 }
 0x325   :  { %v868_v54 = vadd.f32 %v1577_v53, %v1980_v50 }
 0x326   :  { %v862_v55 = vpop.f32.mrf.mxu1 }
 0x327   :  { %v863_v56 = vadd.f32 %v1980_v50, %v862_v55  ;;  %v942_v57 = vmul.f32 0.01, %v868_v54 }
 0x328   :  { %v1580_v58 = vpop.f32.mrf.mxu1 }
 0x329   :  { %v941_v59 = vmul.f32 0.01, %v863_v56  ;;  %v878_v60 = vadd.f32 %v1580_v58, %v1980_v50  ;;  %v958_v0 = vmax.f32 %v868_v54, %v942_v57  ;;  %v2014_v54 = vld [vmem:[#allocation2] ss:$0 sm:$0xff] }
 0x32a   :  { %v872_v61 = vpop.f32.mrf.mxu1 }
 0x32b   :  { %v957_v62 = vmax.f32 %v863_v56, %v941_v59  ;;  %v873_v63 = vadd.f32 %v1980_v50, %v872_v61  ;;  %v944_v1 = vmul.f32 0.01, %v878_v60 }
 0x32c   :  { %v1583_v2 = vpop.f32.mrf.mxu1 }
 0x32d   :  { %v943_v3 = vmul.f32 0.01, %v873_v63  ;;  %v888_v4 = vadd.f32 %v1583_v2, %v1980_v50  ;;  %1603 = vmatprep.mubr.msk.f32.mxu0 %vm982_vm4, %v957_v62  ;;  %v960_v8 = vmax.f32 %v878_v60, %v944_v1 }
 0x32e   :  { %v882_v5 = vpop.f32.mrf.mxu1  ;;  %1604 = vmatmul.mubr.msk.f32.vlgmr.msra.gmra.mxu0 %vm982_vm4, %v958_v0 }
 0x32f   :  { %v959_v6 = vmax.f32 %v873_v63, %v943_v3  ;;  %v883_v7 = vadd.f32 %v1980_v50, %v882_v5  ;;  %v946_v9 = vmul.f32 0.01, %v888_v4 }
 0x330   :  { %v1586_v10 = vpop.f32.mrf.mxu1 }
 0x331   :  { %v945_v11 = vmul.f32 0.01, %v883_v7  ;;  %v898_v12 = vadd.f32 %v1586_v10, %v1980_v50  ;;  %1606 = vmatprep.mubr.msk.f32.mxu0 %vm982_vm4, %v959_v6  ;;  %v962_v16 = vmax.f32 %v888_v4, %v946_v9 }
 0x332   :  { %v892_v13 = vpop.f32.mrf.mxu1  ;;  %1607 = vmatmul.mubr.msk.f32.gmra.mxu0 %vm982_vm4, %v960_v8 }
 0x333   :  { %v961_v14 = vmax.f32 %v883_v7, %v945_v11  ;;  %v893_v15 = vadd.f32 %v1980_v50, %v892_v13  ;;  %v948_v17 = vmul.f32 0.01, %v898_v12 }
 0x334   :  { %v1589_v18 = vpop.f32.mrf.mxu1 }
 0x335   :  { %v947_v19 = vmul.f32 0.01, %v893_v15  ;;  %v908_v20 = vadd.f32 %v1589_v18, %v1980_v50  ;;  %1609 = vmatprep.mubr.msk.f32.mxu0 %vm982_vm4, %v961_v14  ;;  %v964_v24 = vmax.f32 %v898_v12, %v948_v17 }
 0x336   :  { %v902_v21 = vpop.f32.mrf.mxu1  ;;  %1610 = vmatmul.mubr.msk.f32.gmra.mxu0 %vm982_vm4, %v962_v16 }
 0x337   :  { %v963_v22 = vmax.f32 %v893_v15, %v947_v19  ;;  %v903_v23 = vadd.f32 %v1980_v50, %v902_v21  ;;  %v950_v25 = vmul.f32 0.01, %v908_v20 }
 0x338   :  { %v1592_v26 = vpop.f32.mrf.mxu1 }
 0x339   :  { %v949_v27 = vmul.f32 0.01, %v903_v23  ;;  %v918_v28 = vadd.f32 %v1592_v26, %v1980_v50  ;;  %1612 = vmatprep.mubr.msk.f32.mxu0 %vm982_vm4, %v963_v22  ;;  %v966_v32 = vmax.f32 %v908_v20, %v950_v25 }
 0x33a   :  { %v912_v29 = vpop.f32.mrf.mxu1  ;;  %1613 = vmatmul.mubr.msk.f32.gmra.mxu0 %vm982_vm4, %v964_v24 }
 0x33b   :  { %v965_v30 = vmax.f32 %v903_v23, %v949_v27  ;;  %v913_v31 = vadd.f32 %v1980_v50, %v912_v29  ;;  %v952_v33 = vmul.f32 0.01, %v918_v28 }
 0x33c   :  { %v1595_v34 = vpop.f32.mrf.mxu1 }
 0x33d   :  { %v951_v35 = vmul.f32 0.01, %v913_v31  ;;  %v928_v36 = vadd.f32 %v1595_v34, %v1980_v50  ;;  %1615 = vmatprep.mubr.msk.f32.mxu0 %vm982_vm4, %v965_v30  ;;  %v968_v41 = vmax.f32 %v918_v28, %v952_v33 }
 0x33e   :  { %v922_v37 = vpop.f32.mrf.mxu1  ;;  %1616 = vmatmul.mubr.msk.f32.gmra.mxu0 %vm982_vm4, %v966_v32 }
 0x33f   :  { %v967_v38 = vmax.f32 %v913_v31, %v951_v35  ;;  %v923_v39 = vadd.f32 %v1980_v50, %v922_v37  ;;  %v954_v42 = vmul.f32 0.01, %v928_v36 }
 0x340   :  { %v1598_v43 = vpop.f32.mrf.mxu1 }
 0x341   :  { %v953_v40 = vmul.f32 0.01, %v923_v39  ;;  %v938_v44 = vadd.f32 %v1598_v43, %v1980_v50  ;;  %1618 = vmatprep.mubr.msk.f32.mxu0 %vm982_vm4, %v967_v38  ;;  %v970_v46 = vmax.f32 %v928_v36, %v954_v42 }
 0x342   :  { %v932_v45 = vpop.f32.mrf.mxu1  ;;  %1619 = vmatmul.mubr.msk.f32.gmra.mxu0 %vm982_vm4, %v968_v41 }
 0x343   :  { %v969_v47 = vmax.f32 %v923_v39, %v953_v40  ;;  %v933_v48 = vadd.f32 %v1980_v50, %v932_v45  ;;  %v956_v49 = vmul.f32 0.01, %v938_v44 }
 0x345   :  { %v955_v51 = vmul.f32 0.01, %v933_v48  ;;  %1621 = vmatprep.mubr.msk.f32.mxu0 %vm982_vm4, %v969_v47  ;;  %v972_v53 = vmax.f32 %v938_v44, %v956_v49 }
 0x346   :  { %1622 = vmatmul.mubr.msk.f32.gmra.mxu0 %vm982_vm4, %v970_v46 }
 0x347   :  { %v971_v52 = vmax.f32 %v933_v48, %v955_v51 }
 0x349   :  { %1624 = vmatprep.mubr.msk.f32.mxu0 %vm982_vm4, %v971_v52 }
 0x34a   :  { %1625 = vmatmul.mubr.msk.f32.gmra.mxu0 %vm982_vm4, %v972_v53 }
 0x3ee   :  { %v1605_v55 = vpop.f32.mrf.mxu0 }
 0x3ef   :  { %v1103_v56 = vadd.f32 %v1605_v55, %v2014_v54 }
 0x3f0   :  { %v1097_v57 = vpop.f32.mrf.mxu0 }
 0x3f1   :  { %v1177_v50 = vmul.f32 0.5, %v1103_v56  ;;  %v1098_v58 = vadd.f32 %v2014_v54, %v1097_v57 }
 0x3f2   :  { %v1608_v59 = vpop.f32.mrf.mxu0 }
 0x3f3   :  { %1627 = vtanh.f32 %v1177_v50  ;;  %v1176_v60 = vmul.f32 0.5, %v1098_v58  ;;  %v1113_v61 = vadd.f32 %v1608_v59, %v2014_v54 }
 0x3f4   :  { %v1107_v62 = vpop.f32.mrf.mxu0 }
 0x3f5   :  { %1629 = vtanh.f32 %v1176_v60  ;;  %v1179_v63 = vmul.f32 0.5, %v1113_v61  ;;  %v1108_v0 = vadd.f32 %v2014_v54, %v1107_v62 }
 0x3f6   :  { %v1611_v1 = vpop.f32.mrf.mxu0 }
 0x3f7   :  { %1631 = vtanh.f32 %v1179_v63  ;;  %v1178_v2 = vmul.f32 0.5, %v1108_v0  ;;  %v1123_v3 = vadd.f32 %v1611_v1, %v2014_v54 }
 0x3f8   :  { %v1117_v4 = vpop.f32.mrf.mxu0 }
 0x3f9   :  { %1633 = vtanh.f32 %v1178_v2  ;;  %v1181_v5 = vmul.f32 0.5, %v1123_v3  ;;  %v1118_v6 = vadd.f32 %v2014_v54, %v1117_v4 }
 0x3fa   :  { %v1614_v7 = vpop.f32.mrf.mxu0 }
 0x3fb   :  { %1635 = vtanh.f32 %v1181_v5  ;;  %v1180_v8 = vmul.f32 0.5, %v1118_v6  ;;  %v1133_v9 = vadd.f32 %v1614_v7, %v2014_v54 }
 0x3fc   :  { %v1127_v10 = vpop.f32.mrf.mxu0 }
 0x3fd   :  { %1637 = vtanh.f32 %v1180_v8  ;;  %v1183_v11 = vmul.f32 0.5, %v1133_v9  ;;  %v1128_v12 = vadd.f32 %v2014_v54, %v1127_v10 }
 0x3fe   :  { %v1617_v13 = vpop.f32.mrf.mxu0 }
 0x3ff   :  { %1639 = vtanh.f32 %v1183_v11  ;;  %v1182_v14 = vmul.f32 0.5, %v1128_v12  ;;  %v1143_v15 = vadd.f32 %v1617_v13, %v2014_v54 }
 0x400   :  { %v1628_v16 = vpop.eup %1627  ;;  %v1137_v17 = vpop.f32.mrf.mxu0 }
 0x401   :  { %v1209_v18 = vadd.f32 1.0, %v1628_v16  ;;  %1641 = vtanh.f32 %v1182_v14  ;;  %v1185_v19 = vmul.f32 0.5, %v1143_v15  ;;  %v1138_v20 = vadd.f32 %v2014_v54, %v1137_v17 }
 0x402   :  { %v1630_v21 = vpop.eup %1629  ;;  %v1620_v22 = vpop.f32.mrf.mxu0 }
 0x403   :  { %v1225_v23 = vmul.f32 0.5, %v1209_v18  ;;  %v1208_v24 = vadd.f32 1.0, %v1630_v21  ;;  %1643 = vtanh.f32 %v1185_v19  ;;  %v1184_v25 = vmul.f32 0.5, %v1138_v20 }
 0x404   :  { %v1632_v26 = vpop.eup %1631  ;;  %v1153_v27 = vadd.f32 %v1620_v22, %v2014_v54  ;;  %v1147_v28 = vpop.f32.mrf.mxu0 }
 0x405   :  { %1242 = vst.msk [vmem:[%s2107_s11 + $0x8] sm:$0xff] %vm1240_vm5, %v1225_v23  ;;  %v1224_v29 = vmul.f32 0.5, %v1208_v24  ;;  %v1211_v30 = vadd.f32 1.0, %v1632_v26  ;;  %1645 = vtanh.f32 %v1184_v25  ;;  %v1148_v31 = vadd.f32 %v2014_v54, %v1147_v28 }
 0x406   :  { %v1634_v32 = vpop.eup %1633  ;;  %v1187_v33 = vmul.f32 0.5, %v1153_v27  ;;  %v1623_v34 = vpop.f32.mrf.mxu0 }
 0x407   :  { %1241 = vst.msk [vmem:[%s2107_s11] sm:$0xff] %vm1240_vm5, %v1224_v29  ;;  %v1227_v35 = vmul.f32 0.5, %v1211_v30  ;;  %v1210_v36 = vadd.f32 1.0, %v1634_v32  ;;  %v1186_v37 = vmul.f32 0.5, %v1148_v31  ;;  %v1163_v38 = vadd.f32 %v1623_v34, %v2014_v54 }
 0x408   :  { %v1636_v39 = vpop.eup %1635  ;;  %1647 = vtanh.f32 %v1187_v33  ;;  %v1157_v41 = vpop.f32.mrf.mxu0 }
 0x409   :  { %1244 = vst.msk [vmem:[%s2107_s11 + $0x18] sm:$0xff] %vm1240_vm5, %v1227_v35  ;;  %v1226_v42 = vmul.f32 0.5, %v1210_v36  ;;  %v1213_v43 = vadd.f32 1.0, %v1636_v39  ;;  %1649 = vtanh.f32 %v1186_v37  ;;  %v1189_v40 = vmul.f32 0.5, %v1163_v38 }
 0x40a   :  { %v1638_v44 = vpop.eup %1637  ;;  %v1158_v45 = vadd.f32 %v2014_v54, %v1157_v41  ;;  %v1626_v47 = vpop.f32.mrf.mxu0 }
 0x40b   :  { %1243 = vst.msk [vmem:[%s2107_s11 + $0x10] sm:$0xff] %vm1240_vm5, %v1226_v42  ;;  %v1229_v48 = vmul.f32 0.5, %v1213_v43  ;;  %v1212_v46 = vadd.f32 1.0, %v1638_v44  ;;  %1651 = vtanh.f32 %v1189_v40  ;;  %v1173_v49 = vadd.f32 %v1626_v47, %v2014_v54 }
 0x40c   :  { %v1640_v51 = vpop.eup %1639  ;;  %v1188_v52 = vmul.f32 0.5, %v1158_v45  ;;  %v1167_v53 = vpop.f32.mrf.mxu0 }
 0x40d   :  { %1246 = vst.msk [vmem:[%s2107_s11 + $0x28] sm:$0xff] %vm1240_vm5, %v1229_v48  ;;  %v1228_v55 = vmul.f32 0.5, %v1212_v46  ;;  %v1215_v56 = vadd.f32 1.0, %v1640_v51  ;;  %v1191_v57 = vmul.f32 0.5, %v1173_v49  ;;  %v1168_v50 = vadd.f32 %v2014_v54, %v1167_v53 }
 0x40e   :  { %v1642_v58 = vpop.eup %1641  ;;  %1653 = vtanh.f32 %v1188_v52 }
 0x40f   :  { %1245 = vst.msk [vmem:[%s2107_s11 + $0x20] sm:$0xff] %vm1240_vm5, %v1228_v55  ;;  %v1231_v59 = vmul.f32 0.5, %v1215_v56  ;;  %v1214_v60 = vadd.f32 1.0, %v1642_v58  ;;  %1655 = vtanh.f32 %v1191_v57  ;;  %v1190_v61 = vmul.f32 0.5, %v1168_v50 }
 0x410   :  { %v1644_v62 = vpop.eup %1643 }
 0x411   :  { %1248 = vst.msk [vmem:[%s2107_s11 + $0x38] sm:$0xff] %vm1240_vm5, %v1231_v59  ;;  %v1230_v63 = vmul.f32 0.5, %v1214_v60  ;;  %v1217_v0 = vadd.f32 1.0, %v1644_v62  ;;  %1657 = vtanh.f32 %v1190_v61 }
 0x412   :  { %v1646_v54 = vpop.eup %1645 }
 0x413   :  { %1247 = vst.msk [vmem:[%s2107_s11 + $0x30] sm:$0xff] %vm1240_vm5, %v1230_v63  ;;  %v1233_v1 = vmul.f32 0.5, %v1217_v0  ;;  %v1216_v2 = vadd.f32 1.0, %v1646_v54 }
 0x415   :  { %v1648_v3 = vpop.eup %1647  ;;  %1250 = vst.msk [vmem:[%s2107_s11 + $0x48] sm:$0xff] %vm1240_vm5, %v1233_v1  ;;  %v1232_v4 = vmul.f32 0.5, %v1216_v2 }
 0x416   :  { %v1650_v5 = vpop.eup %1649  ;;  %v1219_v6 = vadd.f32 1.0, %v1648_v3 }
 0x417   :  { %1249 = vst.msk [vmem:[%s2107_s11 + $0x40] sm:$0xff] %vm1240_vm5, %v1232_v4  ;;  %v1218_v7 = vadd.f32 1.0, %v1650_v5 }
 0x418   :  { %v1652_v8 = vpop.eup %1651  ;;  %v1235_v9 = vmul.f32 0.5, %v1219_v6 }
 0x419   :  { %v1234_v10 = vmul.f32 0.5, %v1218_v7  ;;  %v1221_v11 = vadd.f32 1.0, %v1652_v8 }
 0x41a   :  { %1252 = vst.msk [vmem:[%s2107_s11 + $0x58] sm:$0xff] %vm1240_vm5, %v1235_v9 }
 0x41b   :  { %v1654_v12 = vpop.eup %1653  ;;  %1251 = vst.msk [vmem:[%s2107_s11 + $0x50] sm:$0xff] %vm1240_vm5, %v1234_v10  ;;  %v1237_v13 = vmul.f32 0.5, %v1221_v11 }
 0x41c   :  { %v1656_v14 = vpop.eup %1655  ;;  %v1220_v15 = vadd.f32 1.0, %v1654_v12 }
 0x41d   :  { %1254 = vst.msk [vmem:[%s2107_s11 + $0x68] sm:$0xff] %vm1240_vm5, %v1237_v13  ;;  %v1223_v16 = vadd.f32 1.0, %v1656_v14 }
 0x41e   :  { %v1658_v17 = vpop.eup %1657  ;;  %v1236_v18 = vmul.f32 0.5, %v1220_v15 }
 0x41f   :  { %v1239_v19 = vmul.f32 0.5, %v1223_v16  ;;  %v1222_v20 = vadd.f32 1.0, %v1658_v17 }
 0x420   :  { %1253 = vst.msk [vmem:[%s2107_s11 + $0x60] sm:$0xff] %vm1240_vm5, %v1236_v18 }
 0x421   :  { %1256 = vst.msk [vmem:[%s2107_s11 + $0x78] sm:$0xff] %vm1240_vm5, %v1239_v19  ;;  %v1238_v21 = vmul.f32 0.5, %v1222_v20 }
 0x423   :  { %1255 = vst.msk [vmem:[%s2107_s11 + $0x70] sm:$0xff] %vm1240_vm5, %v1238_v21 }

</bundles_post_ra>
